<compile_context>
chip_gen: v7x
topology: tpu7x:2x2x1
jax: 0.10.0
libtpu: 0.0.40
codegen_flags: <defaults>
</compile_context>

<pallas_src>
import functools

import jax
import jax.numpy as jnp
from jax.experimental import pallas as pl
from jax.experimental.pallas import tpu as pltpu

LN_EPS = 1e-5


# ----------------------------------------------------------------------------
# Small helpers (device-dependent knobs + tiling/padding).
# ----------------------------------------------------------------------------
def _device_kind():
    try:
        return jax.devices()[0].device_kind.lower()
    except Exception:  # pragma: no cover
        return ""


def _vmem_limit_bytes():
    kind = _device_kind()
    if any(t in kind for t in ("v4", "v5", "v6")):
        return 100 * 1024 * 1024        # 128 MiB physical parts
    return 48 * 1024 * 1024             # v7x-class (64 MiB physical) / unknown


def _use_bf16_eup():
    # bf16 EUP (exp / sigmoid) exists on v6e/v7x; keep f32 on v5e and older.
    kind = _device_kind()
    return not any(t in kind for t in ("v2", "v3", "v4", "v5"))


def _compiler_params(dim_sem):
    return pltpu.CompilerParams(dimension_semantics=dim_sem,
                                vmem_limit_bytes=_vmem_limit_bytes())


def _choose_tile_and_pad(dim, target):
    """Tile size + padded extent for a token-like axis (pad instead of one giant block)."""
    if dim <= target:
        return dim, dim
    padded = -(-dim // target) * target
    return target, padded


def _pad_rows(x, rows):
    if x.shape[0] == rows:
        return x
    pad = jnp.zeros((rows - x.shape[0],) + x.shape[1:], x.dtype)
    return jnp.concatenate([x, pad], axis=0)


# ----------------------------------------------------------------------------
# Kernel 1: ln_1 + QKV projection (token-tiled, fully parallel).
#           Writes bf16 Q (scaled, bias folded) and bf16 KV.
# ----------------------------------------------------------------------------
def _qkv_proj_kernel(x_ref, ln_w_ref, ln_b_ref, wq_ref, wkv_ref, bq_ref, bkv_ref,
                     q_ref, kv_ref, *, scale):
    x = x_ref[...]                                   # (TM, E) f32
    m = jnp.mean(x, axis=-1, keepdims=True)
    var = jnp.mean((x - m) ** 2, axis=-1, keepdims=True)
    xn = ((x - m) * jax.lax.rsqrt(var + LN_EPS) * ln_w_ref[...]
          + ln_b_ref[...]).astype(jnp.bfloat16)
    q = jnp.dot(xn, wq_ref[...], preferred_element_type=jnp.float32) + bq_ref[...]
    q_ref[...] = (q * scale).astype(jnp.bfloat16)
    kv = jnp.dot(xn, wkv_ref[...], preferred_element_type=jnp.float32) + bkv_ref[...]
    kv_ref[...] = kv.astype(jnp.bfloat16)


def qkv_projection(x_me, ln_w, ln_b, in_proj_w, in_proj_b, n_head):
    M, E = x_me.shape
    Dh = E // n_head
    scale = 1.0 / (Dh ** 0.5)
    TM, Mp = _choose_tile_and_pad(M, 512)
    xp = _pad_rows(x_me, Mp)
    wq_t = in_proj_w[:E].T.astype(jnp.bfloat16)          # (E, E)   W_q
    wkv_t = in_proj_w[E:].T.astype(jnp.bfloat16)         # (E, 2E)  [W_k | W_v]
    bq = in_proj_b[:E].reshape(1, E)
    bkv = in_proj_b[E:].reshape(1, 2 * E)
    q, kv = pl.pallas_call(
        functools.partial(_qkv_proj_kernel, scale=scale),
        out_shape=(jax.ShapeDtypeStruct((Mp, E), jnp.bfloat16),
                   jax.ShapeDtypeStruct((Mp, 2 * E), jnp.bfloat16)),
        grid=(Mp // TM,),
        in_specs=[
            pl.BlockSpec((TM, E), lambda i: (i, 0)),
            pl.BlockSpec((1, E), lambda i: (0, 0)),
            pl.BlockSpec((1, E), lambda i: (0, 0)),
            pl.BlockSpec((E, E), lambda i: (0, 0)),          # resident W_q
            pl.BlockSpec((E, 2 * E), lambda i: (0, 0)),       # resident W_kv
            pl.BlockSpec((1, E), lambda i: (0, 0)),
            pl.BlockSpec((1, 2 * E), lambda i: (0, 0)),
        ],
        out_specs=(pl.BlockSpec((TM, E), lambda i: (i, 0)),
                   pl.BlockSpec((TM, 2 * E), lambda i: (i, 0))),
        compiler_params=_compiler_params(("parallel",)),
    )(xp, ln_w.reshape(1, E), ln_b.reshape(1, E), wq_t, wkv_t, bq, bkv)
    return q[:M], kv[:M]


# ----------------------------------------------------------------------------
# Kernel 2: per-head softmax attention + out_proj + fused residual.
#           Grid = (batch, query tiles), both axes parallel.
# ----------------------------------------------------------------------------
def _attn_kernel(x_ref, q_ref, kv_ref, wout_ref, bout_ref, out_ref, attnw_ref,
                 *, n_head, bf16_eup):
    x = x_ref[0]                                     # (TQ, E) f32 (residual source)
    q_all = q_ref[0]                                 # (TQ, E) bf16, already scaled
    kv = kv_ref[0]                                   # (L, 2E)  bf16
    E = x.shape[-1]
    Dh = E // n_head
    b_out = bout_ref[...]                            # (1, E) f32
    inv_heads = 1.0 / n_head
    dn = (((1,), (1,)), ((), ()))                    # contract last dims (no k transpose)

    acc = None                                       # out_proj accumulation (f32 value)
    w_avg = None                                     # head-averaged attn weights (f32 value)
    for h in range(n_head):                          # static unroll over heads
        q = q_all[:, h * Dh:(h + 1) * Dh]
        k = kv[:, h * Dh:(h + 1) * Dh]
        v = kv[:, E + h * Dh:E + (h + 1) * Dh]
        s = jax.lax.dot_general(q, k, dn, preferred_element_type=jnp.float32)  # (TQ, L)
        s = s - jnp.max(s, axis=-1, keepdims=True)
        if bf16_eup:
            p = jnp.exp(s.astype(jnp.bfloat16)).astype(jnp.float32)
        else:
            p = jnp.exp(s)
        w = p * pl.reciprocal(jnp.sum(p, axis=-1, keepdims=True), approx=True)
        w_avg = w * inv_heads if h == 0 else w_avg + w * inv_heads
        ctx = jnp.dot(w.astype(jnp.bfloat16), v,
                      preferred_element_type=jnp.float32)                       # (TQ, Dh)
        part = jnp.dot(ctx.astype(jnp.bfloat16), wout_ref[h],
                       preferred_element_type=jnp.float32)                      # (TQ, E)
        acc = part if h == 0 else acc + part

    out_ref[0] = x + acc + b_out                     # fused residual
    attnw_ref[0] = w_avg                             # single store (no per-head RMW)


def attention_block(x_ble, q_ble, kv_ble, w_out, b_out, n_head):
    B, L, E = x_ble.shape
    Dh = E // n_head
    TQ, Lp = _choose_tile_and_pad(L, 256)
    if Lp != L:
        def _padq(a):
            z = jnp.zeros((B, Lp - L, a.shape[-1]), a.dtype)
            return jnp.concatenate([a, z], axis=1)
        x_q, q_q = _padq(x_ble), _padq(q_ble)
    else:
        x_q, q_q = x_ble, q_ble
    NQ = Lp // TQ
    wout_hm = w_out.T.reshape(n_head, Dh, E).astype(jnp.bfloat16)   # head-major out_proj

    kernel = functools.partial(_attn_kernel, n_head=n_head, bf16_eup=_use_bf16_eup())
    out, attnw = pl.pallas_call(
        kernel,
        out_shape=(jax.ShapeDtypeStruct((B, Lp, E), jnp.float32),
                   jax.ShapeDtypeStruct((B, Lp, L), jnp.float32)),
        grid=(B, NQ),
        in_specs=[
            pl.BlockSpec((1, TQ, E), lambda b, qi: (b, qi, 0)),      # x tile (residual)
            pl.BlockSpec((1, TQ, E), lambda b, qi: (b, qi, 0)),      # Q tile (bf16)
            pl.BlockSpec((1, L, 2 * E), lambda b, qi: (b, 0, 0)),    # full K/V (bf16)
            pl.BlockSpec((n_head, Dh, E), lambda b, qi: (0, 0, 0)),  # head-major W_out
            pl.BlockSpec((1, E), lambda b, qi: (0, 0)),
        ],
        out_specs=(pl.BlockSpec((1, TQ, E), lambda b, qi: (b, qi, 0)),
                   pl.BlockSpec((1, TQ, L), lambda b, qi: (b, qi, 0))),
        compiler_params=_compiler_params(("parallel", "parallel")),
    )(x_q, q_q, kv_ble, wout_hm, b_out.reshape(1, E))
    if Lp != L:
        out = out[:, :L]
        attnw = attnw[:, :L]
    return out, attnw


# ----------------------------------------------------------------------------
# Kernel 3: ln_2 + MLP (c_fc -> QuickGELU -> c_proj) + residual, tiled over tokens.
# ----------------------------------------------------------------------------
def _mlp_kernel(x_ref, ln_w_ref, ln_b_ref, wfc_ref, bfc_ref, wpr_ref, bpr_ref,
                out_ref, *, bf16_eup):
    x = x_ref[...]                                   # (TM, E) f32
    m = jnp.mean(x, axis=-1, keepdims=True)
    var = jnp.mean((x - m) ** 2, axis=-1, keepdims=True)
    xn = ((x - m) * jax.lax.rsqrt(var + LN_EPS) * ln_w_ref[...]
          + ln_b_ref[...]).astype(jnp.bfloat16)
    h = jnp.dot(xn, wfc_ref[...], preferred_element_type=jnp.float32) + bfc_ref[...]
    if bf16_eup:
        g = jax.nn.sigmoid((1.702 * h).astype(jnp.bfloat16)).astype(jnp.float32)
    else:
        g = jax.nn.sigmoid(1.702 * h)
    h = h * g                                        # QuickGELU
    y = jnp.dot(h.astype(jnp.bfloat16), wpr_ref[...],
                preferred_element_type=jnp.float32) + bpr_ref[...]
    out_ref[...] = x + y                             # fused residual


def mlp_block(x_me, ln_w, ln_b, w_fc, b_fc, w_proj, b_proj):
    M, E = x_me.shape
    H = w_fc.shape[0]
    TM, Mp = _choose_tile_and_pad(M, 512)
    xp = _pad_rows(x_me, Mp)
    out = pl.pallas_call(
        functools.partial(_mlp_kernel, bf16_eup=_use_bf16_eup()),
        out_shape=jax.ShapeDtypeStruct((Mp, E), jnp.float32),
        grid=(Mp // TM,),
        in_specs=[
            pl.BlockSpec((TM, E), lambda i: (i, 0)),
            pl.BlockSpec((1, E), lambda i: (0, 0)),
            pl.BlockSpec((1, E), lambda i: (0, 0)),
            pl.BlockSpec((E, H), lambda i: (0, 0)),      # resident weights
            pl.BlockSpec((1, H), lambda i: (0, 0)),
            pl.BlockSpec((H, E), lambda i: (0, 0)),
            pl.BlockSpec((1, E), lambda i: (0, 0)),
        ],
        out_specs=pl.BlockSpec((TM, E), lambda i: (i, 0)),
        compiler_params=_compiler_params(("parallel",)),
    )(xp, ln_w.reshape(1, E), ln_b.reshape(1, E),
      w_fc.T.astype(jnp.bfloat16), b_fc.reshape(1, H),
      w_proj.T.astype(jnp.bfloat16), b_proj.reshape(1, E))
    return out[:M]


# ----------------------------------------------------------------------------
# Kernel 4: 1x1 Conv2d == per-token linear; output channels padded to 128 lanes.
# ----------------------------------------------------------------------------
def _conv_kernel(x_ref, w_ref, b_ref, out_ref):
    out_ref[...] = (jnp.dot(x_ref[...].astype(jnp.bfloat16), w_ref[...],
                            preferred_element_type=jnp.float32) + b_ref[...])


def pointwise_conv(x_me, w_oc, b_o):
    M, E = x_me.shape
    O = w_oc.shape[0]
    O_pad = ((O + 127) // 128) * 128                 # lane-dense (unmasked) stores
    w_pad = jnp.zeros((O_pad, E), jnp.float32).at[:O].set(w_oc)
    b_pad = jnp.zeros((O_pad,), jnp.float32).at[:O].set(b_o)
    TM, Mp = _choose_tile_and_pad(M, 512)
    xp = _pad_rows(x_me, Mp)
    out = pl.pallas_call(
        _conv_kernel,
        out_shape=jax.ShapeDtypeStruct((Mp, O_pad), jnp.float32),
        grid=(Mp // TM,),
        in_specs=[
            pl.BlockSpec((TM, E), lambda i: (i, 0)),
            pl.BlockSpec((E, O_pad), lambda i: (0, 0)),
            pl.BlockSpec((1, O_pad), lambda i: (0, 0)),
        ],
        out_specs=pl.BlockSpec((TM, O_pad), lambda i: (i, 0)),
        compiler_params=_compiler_params(("parallel",)),
    )(xp, w_pad.T.astype(jnp.bfloat16), b_pad.reshape(1, O_pad))
    return out[:M, :O]


# ----------------------------------------------------------------------------
# Full DecoderTransformer forward.
# ----------------------------------------------------------------------------
def decoder_transformer_forward(x_nchw, params):
    b, c, h, w = x_nchw.shape
    L = h * w
    E = c
    n_head = params["heads"]
    x = x_nchw.reshape(b, c, L).transpose(0, 2, 1)           # (B, L, E) f32

    attn_weights_list = []
    for layer in params["layers"]:
        # ln_1 + QKV projection (token-parallel, bf16 outputs)
        q2d, kv2d = qkv_projection(x.reshape(b * L, E),
                                   layer["ln1_w"], layer["ln1_b"],
                                   layer["in_proj_w"], layer["in_proj_b"], n_head)
        q = q2d.reshape(b, L, E)
        kv = kv2d.reshape(b, L, 2 * E)
        # attention + out_proj + residual (both grid axes parallel)
        x, attn_w = attention_block(x, q, kv,
                                    layer["out_proj_w"], layer["out_proj_b"], n_head)
        attn_weights_list.append(attn_w)                     # (B, L, L), head-averaged
        # ln_2 + MLP + residual
        x = mlp_block(x.reshape(b * L, E),
                      layer["ln2_w"], layer["ln2_b"],
                      layer["fc_w"], layer["fc_b"],
                      layer["proj_w"], layer["proj_b"]).reshape(b, L, E)

    logits2d = pointwise_conv(x.reshape(b * L, E), params["conv_w"], params["conv_b"])
    O = params["conv_w"].shape[0]
    logit = logits2d.reshape(b, L, O).transpose(0, 2, 1).reshape(b, O, h, w)
    return logit, attn_weights_list


# ----------------------------------------------------------------------------
# Pure-JAX reference (f32 everywhere) for a sanity check.
# ----------------------------------------------------------------------------
def _ln(x, w, b):
    m = jnp.mean(x, -1, keepdims=True)
    v = jnp.mean((x - m) ** 2, -1, keepdims=True)
    return (x - m) * jax.lax.rsqrt(v + LN_EPS) * w + b


def reference_forward(x_nchw, params):
    b, c, h, w = x_nchw.shape
    L = h * w
    H = params["heads"]
    Dh = c // H
    x = x_nchw.reshape(b, c, L).transpose(0, 2, 1)
    attn_ws = []
    for lyr in params["layers"]:
        xn = _ln(x, lyr["ln1_w"], lyr["ln1_b"])
        qkv = xn @ lyr["in_proj_w"].T + lyr["in_proj_b"]
        q, k, v = jnp.split(qkv, 3, axis=-1)
        q = q.reshape(b, L, H, Dh).transpose(0, 2, 1, 3) / (Dh ** 0.5)
        k = k.reshape(b, L, H, Dh).transpose(0, 2, 1, 3)
        v = v.reshape(b, L, H, Dh).transpose(0, 2, 1, 3)
        s = jnp.einsum("bhqd,bhkd->bhqk", q, k)
        wgt = jax.nn.softmax(s, axis=-1)
        ctx = jnp.einsum("bhqk,bhkd->bhqd", wgt, v).transpose(0, 2, 1, 3).reshape(b, L, c)
        attn_out = ctx @ lyr["out_proj_w"].T + lyr["out_proj_b"]
        attn_ws.append(jnp.mean(wgt, axis=1))
        x = x + attn_out
        xn2 = _ln(x, lyr["ln2_w"], lyr["ln2_b"])
        hdn = xn2 @ lyr["fc_w"].T + lyr["fc_b"]
        hdn = hdn * jax.nn.sigmoid(1.702 * hdn)
        x = x + hdn @ lyr["proj_w"].T + lyr["proj_b"]
    logit = x @ params["conv_w"].T + params["conv_b"]
    logit = logit.transpose(0, 2, 1).reshape(b, params["conv_w"].shape[0], h, w)
    return logit, attn_ws


# ----------------------------------------------------------------------------
# Deterministic parameter init (shapes match the PyTorch module __init__).
# ----------------------------------------------------------------------------
def init_params(key, width, layers, heads, output_dim):
    params = {"heads": heads, "layers": []}
    for _ in range(layers):
        keys = jax.random.split(key, 7)
        key = keys[0]
        layer = {
            "ln1_w": jnp.ones((width,), jnp.float32),
            "ln1_b": jnp.zeros((width,), jnp.float32),
            "in_proj_w": 0.05 * jax.random.normal(keys[1], (3 * width, width), jnp.float32),
            "in_proj_b": 0.01 * jax.random.normal(keys[2], (3 * width,), jnp.float32),
            "out_proj_w": 0.05 * jax.random.normal(keys[3], (width, width), jnp.float32),
            "out_proj_b": jnp.zeros((width,), jnp.float32),
            "ln2_w": jnp.ones((width,), jnp.float32),
            "ln2_b": jnp.zeros((width,), jnp.float32),
            "fc_w": 0.05 * jax.random.normal(keys[4], (4 * width, width), jnp.float32),
            "fc_b": jnp.zeros((4 * width,), jnp.float32),
            "proj_w": 0.05 * jax.random.normal(keys[5], (width, 4 * width), jnp.float32),
            "proj_b": jnp.zeros((width,), jnp.float32),
        }
        params["layers"].append(layer)
    k1, k2 = jax.random.split(key)
    # 1x1 conv weight stored as (output_dim, width) (== torch weight[:, :, 0, 0])
    params["conv_w"] = 0.05 * jax.random.normal(k1, (output_dim, width), jnp.float32)
    params["conv_b"] = 0.01 * jax.random.normal(k2, (output_dim,), jnp.float32)
    return params


if __name__ == "__main__":
    WIDTH, LAYERS, HEADS, OUTPUT_DIM = 32, 2, 4, 4
    B, H, W = 2, 4, 4

    key = jax.random.PRNGKey(0)
    k_x, k_p = jax.random.split(key)
    x = jax.random.normal(k_x, (B, WIDTH, H, W), jnp.float32)      # NCHW input
    params = init_params(k_p, WIDTH, LAYERS, HEADS, OUTPUT_DIM)

    logit, attn_weights_list = decoder_transformer_forward(x, params)
    logit = jax.block_until_ready(logit)
    attn_weights_list = [jax.block_until_ready(a) for a in attn_weights_list]

    # sanity check against a pure-f32 JAX reference; tolerances account for bf16
    # matmul inputs, bf16 EUP exp/sigmoid (v6e/v7x) and the approx reciprocal.
    ref_logit, ref_attn = reference_forward(x, params)
    assert logit.shape == (B, OUTPUT_DIM, H, W)
    assert len(attn_weights_list) == LAYERS
    assert attn_weights_list[0].shape == (B, H * W, H * W)
    assert jnp.allclose(logit, ref_logit, atol=2e-2, rtol=2e-2)
    for a, r in zip(attn_weights_list, ref_attn):
        assert jnp.allclose(a, r, atol=2e-2, rtol=2e-2)

    print("KERNEL_OK")
</pallas_src>

<mosaic_0001>
module attributes {stable_mosaic.version = 11 : i64} {
  func.func @_qkv_proj_kernel(%arg0: i32, %arg1: memref<32x32xf32, #tpu.memory_space<vmem>>, %arg2: memref<1x32xf32, #tpu.memory_space<vmem>>, %arg3: memref<1x32xf32, #tpu.memory_space<vmem>>, %arg4: memref<32x32xbf16, #tpu.memory_space<vmem>>, %arg5: memref<32x64xbf16, #tpu.memory_space<vmem>>, %arg6: memref<1x32xf32, #tpu.memory_space<vmem>>, %arg7: memref<1x64xf32, #tpu.memory_space<vmem>>, %arg8: memref<32x32xbf16, #tpu.memory_space<vmem>>, %arg9: memref<32x64xbf16, #tpu.memory_space<vmem>>) attributes {dimension_semantics = [#tpu.dimension_semantics<parallel>], iteration_bounds = array<i64: 1>, scalar_prefetch = 0 : i64, scratch_operands = 0 : i64, tpu.core_type = #tpu.core_type<tc>, window_params = [{transform_indices = @transform_0, window_bounds = array<i64: 32, 32>}, {pipeline_mode = #tpu.pipeline_mode<synchronous>, transform_indices = @transform_1, window_bounds = array<i64: 1, 32>}, {pipeline_mode = #tpu.pipeline_mode<synchronous>, transform_indices = @transform_2, window_bounds = array<i64: 1, 32>}, {pipeline_mode = #tpu.pipeline_mode<synchronous>, transform_indices = @transform_3, window_bounds = array<i64: 32, 32>}, {pipeline_mode = #tpu.pipeline_mode<synchronous>, transform_indices = @transform_4, window_bounds = array<i64: 32, 64>}, {pipeline_mode = #tpu.pipeline_mode<synchronous>, transform_indices = @transform_5, window_bounds = array<i64: 1, 32>}, {pipeline_mode = #tpu.pipeline_mode<synchronous>, transform_indices = @transform_6, window_bounds = array<i64: 1, 64>}, {transform_indices = @transform_7, window_bounds = array<i64: 32, 32>}, {transform_indices = @transform_8, window_bounds = array<i64: 32, 64>}]} {
    %c0 = arith.constant 0 : index
    %c0_0 = arith.constant 0 : index
    %0 = vector.load %arg1[%c0, %c0_0] : memref<32x32xf32, #tpu.memory_space<vmem>>, vector<32x32xf32>
    %cst = arith.constant dense<0.000000e+00> : vector<32xf32>
    %1 = vector.multi_reduction <add>, %0, %cst [1] : vector<32x32xf32> to vector<32xf32>
    %2 = vector.shape_cast %1 : vector<32xf32> to vector<32x1xf32>
    %cst_1 = arith.constant 3.200000e+01 : f32
    %3 = vector.broadcast %cst_1 : f32 to vector<32x1xf32>
    %4 = arith.divf %2, %3 : vector<32x1xf32>
    %5 = vector.broadcast %4 : vector<32x1xf32> to vector<32x32xf32>
    %6 = arith.subf %0, %5 : vector<32x32xf32>
    %7 = arith.mulf %6, %6 : vector<32x32xf32>
    %cst_2 = arith.constant dense<0.000000e+00> : vector<32xf32>
    %8 = vector.multi_reduction <add>, %7, %cst_2 [1] : vector<32x32xf32> to vector<32xf32>
    %9 = vector.shape_cast %8 : vector<32xf32> to vector<32x1xf32>
    %cst_3 = arith.constant 3.200000e+01 : f32
    %10 = vector.broadcast %cst_3 : f32 to vector<32x1xf32>
    %11 = arith.divf %9, %10 : vector<32x1xf32>
    %12 = vector.broadcast %4 : vector<32x1xf32> to vector<32x32xf32>
    %13 = arith.subf %0, %12 : vector<32x32xf32>
    %cst_4 = arith.constant 9.99999974E-6 : f32
    %14 = vector.broadcast %cst_4 : f32 to vector<32x1xf32>
    %15 = arith.addf %11, %14 : vector<32x1xf32>
    %16 = math.rsqrt %15 : vector<32x1xf32>
    %17 = vector.broadcast %16 : vector<32x1xf32> to vector<32x32xf32>
    %18 = arith.mulf %13, %17 : vector<32x32xf32>
    %c0_5 = arith.constant 0 : index
    %c0_6 = arith.constant 0 : index
    %19 = vector.load %arg2[%c0_5, %c0_6] : memref<1x32xf32, #tpu.memory_space<vmem>>, vector<1x32xf32>
    %20 = vector.broadcast %19 : vector<1x32xf32> to vector<32x32xf32>
    %21 = arith.mulf %18, %20 : vector<32x32xf32>
    %c0_7 = arith.constant 0 : index
    %c0_8 = arith.constant 0 : index
    %22 = vector.load %arg3[%c0_7, %c0_8] : memref<1x32xf32, #tpu.memory_space<vmem>>, vector<1x32xf32>
    %23 = vector.broadcast %22 : vector<1x32xf32> to vector<32x32xf32>
    %24 = arith.addf %21, %23 : vector<32x32xf32>
    %25 = arith.truncf %24 : vector<32x32xf32> to vector<32x32xbf16>
    %c0_9 = arith.constant 0 : index
    %c0_10 = arith.constant 0 : index
    %26 = vector.load %arg4[%c0_9, %c0_10] : memref<32x32xbf16, #tpu.memory_space<vmem>>, vector<32x32xbf16>
    %cst_11 = arith.constant dense<0.000000e+00> : vector<32x32xf32>
    %27 = tpu.matmul %25, %26, %cst_11 {dimension_numbers = #tpu.dot_dimension_numbers<[1], [0], [0], [1], [0, 0, 1, 1], [], []>} : vector<32x32xbf16>, vector<32x32xbf16>, vector<32x32xf32> -> vector<32x32xf32>
    %c0_12 = arith.constant 0 : index
    %c0_13 = arith.constant 0 : index
    %28 = vector.load %arg6[%c0_12, %c0_13] : memref<1x32xf32, #tpu.memory_space<vmem>>, vector<1x32xf32>
    %29 = vector.broadcast %28 : vector<1x32xf32> to vector<32x32xf32>
    %30 = arith.addf %27, %29 : vector<32x32xf32>
    %cst_14 = arith.constant 0.353553385 : f32
    %31 = vector.broadcast %cst_14 : f32 to vector<32x32xf32>
    %32 = arith.mulf %30, %31 : vector<32x32xf32>
    %33 = arith.truncf %32 : vector<32x32xf32> to vector<32x32xbf16>
    %c0_15 = arith.constant 0 : index
    %c0_16 = arith.constant 0 : index
    %34 = vector.load %arg8[%c0_15, %c0_16] : memref<32x32xbf16, #tpu.memory_space<vmem>>, vector<32x32xbf16>
    tpu.vector_store %arg8[%c0_15, %c0_16], %33 {strides = array<i32>} : memref<32x32xbf16, #tpu.memory_space<vmem>>, vector<32x32xbf16>,
    %c0_17 = arith.constant 0 : index
    %c0_18 = arith.constant 0 : index
    %35 = vector.load %arg5[%c0_17, %c0_18] : memref<32x64xbf16, #tpu.memory_space<vmem>>, vector<32x64xbf16>
    %cst_19 = arith.constant dense<0.000000e+00> : vector<32x64xf32>
    %36 = tpu.matmul %25, %35, %cst_19 {dimension_numbers = #tpu.dot_dimension_numbers<[1], [0], [0], [1], [0, 0, 1, 1], [], []>} : vector<32x32xbf16>, vector<32x64xbf16>, vector<32x64xf32> -> vector<32x64xf32>
    %c0_20 = arith.constant 0 : index
    %c0_21 = arith.constant 0 : index
    %37 = vector.load %arg7[%c0_20, %c0_21] : memref<1x64xf32, #tpu.memory_space<vmem>>, vector<1x64xf32>
    %38 = vector.broadcast %37 : vector<1x64xf32> to vector<32x64xf32>
    %39 = arith.addf %36, %38 : vector<32x64xf32>
    %40 = arith.truncf %39 : vector<32x64xf32> to vector<32x64xbf16>
    %c0_22 = arith.constant 0 : index
    %c0_23 = arith.constant 0 : index
    %41 = vector.load %arg9[%c0_22, %c0_23] : memref<32x64xbf16, #tpu.memory_space<vmem>>, vector<32x64xbf16>
    tpu.vector_store %arg9[%c0_22, %c0_23], %40 {strides = array<i32>} : memref<32x64xbf16, #tpu.memory_space<vmem>>, vector<32x64xbf16>,
    return
  }
  func.func @transform_0(%arg0: i32) -> (i32, i32) {
    %c0_i32 = arith.constant 0 : i32
    %c0_i32_0 = arith.constant 0 : i32
    return %arg0, %c0_i32 : i32, i32
  }
  func.func @transform_1(%arg0: i32) -> (i32, i32) {
    %c0_i32 = arith.constant 0 : i32
    %c0_i32_0 = arith.constant 0 : i32
    %c0_i32_1 = arith.constant 0 : i32
    return %c0_i32, %c0_i32_0 : i32, i32
  }
  func.func @transform_2(%arg0: i32) -> (i32, i32) {
    %c0_i32 = arith.constant 0 : i32
    %c0_i32_0 = arith.constant 0 : i32
    %c0_i32_1 = arith.constant 0 : i32
    return %c0_i32, %c0_i32_0 : i32, i32
  }
  func.func @transform_3(%arg0: i32) -> (i32, i32) {
    %c0_i32 = arith.constant 0 : i32
    %c0_i32_0 = arith.constant 0 : i32
    %c0_i32_1 = arith.constant 0 : i32
    return %c0_i32, %c0_i32_0 : i32, i32
  }
  func.func @transform_4(%arg0: i32) -> (i32, i32) {
    %c0_i32 = arith.constant 0 : i32
    %c0_i32_0 = arith.constant 0 : i32
    %c0_i32_1 = arith.constant 0 : i32
    return %c0_i32, %c0_i32_0 : i32, i32
  }
  func.func @transform_5(%arg0: i32) -> (i32, i32) {
    %c0_i32 = arith.constant 0 : i32
    %c0_i32_0 = arith.constant 0 : i32
    %c0_i32_1 = arith.constant 0 : i32
    return %c0_i32, %c0_i32_0 : i32, i32
  }
  func.func @transform_6(%arg0: i32) -> (i32, i32) {
    %c0_i32 = arith.constant 0 : i32
    %c0_i32_0 = arith.constant 0 : i32
    %c0_i32_1 = arith.constant 0 : i32
    return %c0_i32, %c0_i32_0 : i32, i32
  }
  func.func @transform_7(%arg0: i32) -> (i32, i32) {
    %c0_i32 = arith.constant 0 : i32
    %c0_i32_0 = arith.constant 0 : i32
    return %arg0, %c0_i32 : i32, i32
  }
  func.func @transform_8(%arg0: i32) -> (i32, i32) {
    %c0_i32 = arith.constant 0 : i32
    %c0_i32_0 = arith.constant 0 : i32
    return %arg0, %c0_i32 : i32, i32
  }
}

</mosaic_0001>

<bundles_post_ra>
// kernel: tpu_custom_call.1
= control target key start
LH: loop header
LB: loop body
LE: loop exit
PB: predicated region body
PF: predicated region fallthrough
CT: control target
= control target key end

     0   :  { %14 = vsyncpa [#allocation3], 0  ;;  %s740_s0 = inlined_call_operand.hbm [shape: f32[32,32], index: 0, kind: input, shape index: {}]   ;;  %s741_s1 = inlined_call_operand.vmem [shape: f32[1,32], index: 1, kind: input, shape index: {}]   ;;  %s742_s2 = inlined_call_operand.vmem [shape: f32[1,32], index: 2, kind: input, shape index: {}]   ;;  %s743_s3 = inlined_call_operand.hbm [shape: bf16[32,32], index: 3, kind: input, shape index: {}]   ;;  %s744_s4 = inlined_call_operand.hbm [shape: bf16[32,64], index: 4, kind: input, shape index: {}]   ;;  %s745_s5 = inlined_call_operand.vmem [shape: f32[1,32], index: 5, kind: input, shape index: {}]   ;;  %s746_s6 = inlined_call_operand.vmem [shape: f32[1,64], index: 6, kind: input, shape index: {}]   ;;  %s747_s7 = inlined_call_operand.hbm [shape: bf16[32,32], index: 7, kind: output, shape index: {0}]   ;;  %s748_s8 = inlined_call_operand.hbm [shape: bf16[32,64], index: 8, kind: output, shape index: {1}]  }
   0x1   :  { %15 = vsyncpa [#allocation6], 0 }
   0x2   :  { %16 = vsyncpa [#allocation4], 0 }
   0x3   :  { %17 = vsyncpa [#allocation10], 0  ;;  %s575_s27 = smov [#allocation5]   ;;  %s457_s9 = scalar_lea.hbm %s743_s3, 256 }
   0x4   :  { %s39_s28 = sshll.u32 %s575_s27, 4  ;;  %p458_p0 = scmp.ne.s32.totalorder %s743_s3, %s457_s9  ;;  %s40_s28 = int_to_ptr.vmem [resolvable:$true] %s39_s28 }
   0x5   :  { %p461_p1 = scmp.lt.u32.totalorder %s457_s9, %s743_s3 }
   0x7   :  { %p463_p2 = pnand %p461_p1, %p458_p0 }
   0x9   :  { %466 = shalt.err (!%p463_p2)
}
   0xa   :  { %s467_s14 = scalar_lea.vmem %s40_s28, 256  ;;  %p472_p4 = scmp.lt.s32.totalorder %s40_s28, %s40_s28 }
   0xb   :  { %p468_p3 = scmp.ne.s32.totalorder %s40_s28, %s467_s14  ;;  %p473_p5 = scmp.lt.s32.totalorder %s467_s14, %s467_s14 }
   0xd   :  { %p474_p6 = por %p473_p5, %p472_p4 }
   0xf   :  { %p475_p7 = pnand %p474_p6, %p468_p3 }
  0x11   :  { %478 = shalt.err (!%p475_p7)
}
  0x12   :  { %s576_s15 = smov 64   ;;  %s577_s16 = smov 4  }
  0x13   :  { %45 = dma.hbm_to_vmem [thread:$0]  %s743_s3, 256, %s40_s28, [#allocation6], %s576_s15, %s576_s15, %s577_s16  }
  0x14   :  { %s578_s19 = smov [#allocation2]   ;;  %s479_s23 = scalar_lea.hbm %s740_s0, 512 }
  0x15   :  { %s23_s20 = sshll.u32 %s578_s19, 4  ;;  %p480_p8 = scmp.ne.s32.totalorder %s740_s0, %s479_s23  ;;  %s24_s20 = int_to_ptr.vmem [resolvable:$true] %s23_s20 }
  0x16   :  { %p483_p9 = scmp.lt.u32.totalorder %s479_s23, %s740_s0 }
  0x18   :  { %p485_p10 = pnand %p483_p9, %p480_p8 }
  0x1a   :  { %488 = shalt.err (!%p485_p10)
}
  0x1b   :  { %s489_s29 = scalar_lea.vmem %s24_s20, 512  ;;  %p494_p12 = scmp.lt.s32.totalorder %s24_s20, %s24_s20 }
  0x1c   :  { %p490_p11 = scmp.ne.s32.totalorder %s24_s20, %s489_s29  ;;  %p495_p13 = scmp.lt.s32.totalorder %s489_s29, %s489_s29 }
  0x1e   :  { %p496_p0 = por %p495_p13, %p494_p12 }
  0x20   :  { %p497_p1 = pnand %p496_p0, %p490_p11 }
  0x22   :  { %500 = shalt.err (!%p497_p1)
}
  0x23   :  { %s579_s3 = smov 128   ;;  %s580_s28 = smov 8  }
  0x24   :  { %29 = dma.hbm_to_vmem [thread:$0]  %s740_s0, 512, %s24_s20, [#allocation3], %s579_s3, %s579_s3, %s580_s28  }
  0x25   :  { %s581_s10 = smov [#allocation7]   ;;  %s501_s14 = scalar_lea.hbm %s744_s4, 256 }
  0x26   :  { %s51_s11 = sshll.u32 %s581_s10, 4  ;;  %p502_p2 = scmp.ne.s32.totalorder %s744_s4, %s501_s14  ;;  %s52_s11 = int_to_ptr.vmem [resolvable:$true] %s51_s11 }
  0x27   :  { %p505_p3 = scmp.lt.u32.totalorder %s501_s14, %s744_s4 }
  0x29   :  { %p507_p4 = pnand %p505_p3, %p502_p2 }
  0x2b   :  { %510 = shalt.err (!%p507_p4)
}
  0x2c   :  { %s511_s22 = scalar_lea.vmem %s52_s11, 256  ;;  %p516_p6 = scmp.lt.s32.totalorder %s52_s11, %s52_s11 }
  0x2d   :  { %p512_p5 = scmp.ne.s32.totalorder %s52_s11, %s511_s22  ;;  %p517_p7 = scmp.lt.s32.totalorder %s511_s22, %s511_s22 }
  0x2f   :  { %p518_p8 = por %p517_p7, %p516_p6 }
  0x31   :  { %p519_p9 = pnand %p518_p8, %p512_p5 }
  0x33   :  { %522 = shalt.err (!%p519_p9)
}
  0x34   :  { %57 = dma.hbm_to_vmem [thread:$0]  %s744_s4, 256, %s52_s11, [#allocation6], %s576_s15, %s576_s15, %s577_s16  }
  0x35   :  { %567 = dma.done.wait [#allocation3], 512  }
  0x36   :  { %568 = vsyncadd [#allocation3], 4294966784 }
  0x37   :  { %569 = dma.done.wait [#allocation6], 512  }
  0x38   :  { %570 = vsyncadd [#allocation6], 4294966784  ;;  %vm76_vm0 = vcmask 261120   ;;  %v72_v0 = vld [vmem:[#allocation2] sm:$0xff]  ;;  %v74_v1 = vld [vmem:[#allocation2 + $0x10] sm:$0xff]  ;;  %vm252_vm1 = vcmask 257024  }
  0x39   :  { %v73_v2 = vld [vmem:[#allocation2 + $0x8] sm:$0xff]  ;;  %v77_v3 = vsel %vm76_vm0, %v72_v0, 0.0  ;;  %v83_v4 = vsel %vm76_vm0, %v74_v1, 0.0  ;;  %v75_v5 = vld [vmem:[#allocation2 + $0x18] sm:$0xff]  ;;  %v445_v28 = vld [vmem:[#allocation5] sm:$0xff]   ;;  %vm345_vm2 = vcmask 519168  }
  0x3a   :  { %78 = vadd.xlane.f32.xlu0 %v77_v3  ;;  %84 = vadd.xlane.f32.xlu1 %v83_v4  ;;  %v80_v6 = vsel %vm76_vm0, %v73_v2, 0.0  ;;  %v86_v7 = vsel %vm76_vm0, %v75_v5, 0.0  ;;  %v446_v29 = vld [vmem:[#allocation7] sm:$0xff]   ;;  %v447_v30 = vld [vmem:[#allocation5 + $0x8] sm:$0xff]   ;;  %v448_v31 = vld [vmem:[#allocation7 + $0x8] sm:$0xff]   ;;  %s583_s29 = smov [#allocation8]  }
  0x3b   :  { %420 = vmatprep.subr.bf16.mxu0 %v445_v28  ;;  %428 = vmatprep.subr.bf16.mxu1 %v446_v29  ;;  %v384_v46 = vld [vmem:[%s741_s1] ss:$0 sm:$0xff]  ;;  %s355_s3 = sshll.u32 %s583_s29, 4  ;;  %s701_s3 = int_to_ptr.vmem [resolvable:$true] %s355_s3 }
  0x3c   :  { %421 = vmatpush3.bf16.msra.mxu0 %v445_v28  ;;  %429 = vmatpush3.bf16.msra.mxu1 %v446_v29  ;;  %v385_v52 = vld [vmem:[%s742_s2] ss:$0 sm:$0xff] }
  0x3d   :  { %422 = vmatprep.subr.bf16.mxu0 %v447_v30  ;;  %430 = vmatprep.subr.bf16.mxu1 %v448_v31 }
  0x3e   :  { %81 = vadd.xlane.f32.xlu0 %v80_v6  ;;  %87 = vadd.xlane.f32.xlu1 %v86_v7 }
  0x40   :  { %423 = vmatpush3.bf16.msra.mxu0 %v447_v30  ;;  %431 = vmatpush3.bf16.msra.mxu1 %v448_v31 }
  0xc7   :  { %v79_v8 = vpop.xlane.xlu0 %78  ;;  %v85_v9 = vpop.xlane.xlu1 %84 }
  0xc8   :  { %v90_v10 = vmul.f32 0.03125, %v79_v8  ;;  %v92_v11 = vmul.f32 0.03125, %v85_v9 }
  0xca   :  { %v94_v12 = vsub.f32 %v72_v0, %v90_v10  ;;  %v96_v13 = vsub.f32 %v74_v1, %v92_v11  ;;  %v386_v0 = vld [vmem:[%s745_s5] ss:$0 sm:$0xff]  ;;  %s582_s5 = smov [#allocation9]  }
  0xcb   :  { %v82_v14 = vpop.xlane.xlu0 %81  ;;  %v88_v15 = vpop.xlane.xlu1 %87  ;;  %v395_v1 = vld [vmem:[%s746_s6] ss:$0 sm:$0xff]  ;;  %s367_s6 = sshll.u32 %s582_s5, 4  ;;  %s368_s6 = int_to_ptr.vmem [resolvable:$true] %s367_s6 }
  0xcc   :  { %v91_v16 = vmul.f32 0.03125, %v82_v14  ;;  %v93_v17 = vmul.f32 0.03125, %v88_v15  ;;  %v98_v18 = vmul.f32 %v94_v12, %v94_v12  ;;  %v100_v19 = vmul.f32 %v96_v13, %v96_v13  ;;  %s523_s28 = scalar_lea.vmem %s368_s6, 256  ;;  %p528_p11 = scmp.lt.s32.totalorder %s368_s6, %s368_s6 }
  0xcd   :  { %p524_p10 = scmp.ne.s32.totalorder %s368_s6, %s523_s28  ;;  %p529_p12 = scmp.lt.s32.totalorder %s523_s28, %s523_s28 }
  0xce   :  { %v95_v20 = vsub.f32 %v73_v2, %v91_v16  ;;  %v97_v21 = vsub.f32 %v75_v5, %v93_v17  ;;  %v102_v22 = vsel %vm76_vm0, %v98_v18, 0.0  ;;  %v108_v23 = vsel %vm76_vm0, %v100_v19, 0.0 }
  0xcf   :  { %103 = vadd.xlane.f32.xlu0 %v102_v22  ;;  %p530_p13 = por %p529_p12, %p528_p11 }
  0xd0   :  { %v99_v24 = vmul.f32 %v95_v20, %v95_v20  ;;  %v101_v25 = vmul.f32 %v97_v21, %v97_v21 }
  0xd1   :  { %p531_p0 = pnand %p530_p13, %p524_p10 }
  0xd2   :  { %v105_v26 = vsel %vm76_vm0, %v99_v24, 0.0  ;;  %v111_v27 = vsel %vm76_vm0, %v101_v25, 0.0 }
  0xd3   :  { %109 = vadd.xlane.f32.xlu0 %v108_v23  ;;  %106 = vadd.xlane.f32.xlu1 %v105_v26 }
  0xd7   :  { %112 = vadd.xlane.f32.xlu1 %v111_v27 }
 0x15c   :  { %v104_v32 = vpop.xlane.xlu0 %103 }
 0x15d   :  { %v114_v33 = vmul.f32 0.03125, %v104_v32 }
 0x15f   :  { %v118_v34 = vadd.f32 1e-05, %v114_v33 }
 0x160   :  { %v107_v35 = vpop.xlane.xlu1 %106  ;;  %v110_v36 = vpop.xlane.xlu0 %109 }
 0x161   :  { %449 = vrsqrt.f32 %v118_v34  ;;  %v115_v37 = vmul.f32 0.03125, %v107_v35  ;;  %v116_v38 = vmul.f32 0.03125, %v110_v36 }
 0x163   :  { %v119_v39 = vadd.f32 1e-05, %v115_v37  ;;  %v120_v40 = vadd.f32 1e-05, %v116_v38 }
 0x164   :  { %v113_v41 = vpop.xlane.xlu1 %112 }
 0x165   :  { %451 = vrsqrt.f32 %v119_v39  ;;  %v117_v42 = vmul.f32 0.03125, %v113_v41 }
 0x166   :  { %453 = vrsqrt.f32 %v120_v40 }
 0x167   :  { %v121_v43 = vadd.f32 1e-05, %v117_v42 }
 0x169   :  { %455 = vrsqrt.f32 %v121_v43 }
 0x16b   :  { %v450_v44 = vpop.eup %449 }
 0x16c   :  { %v126_v45 = vmul.f32 %v450_v44, %v94_v12 }
 0x16e   :  { %v137_v50 = vmul.f32 %v384_v46, %v126_v45 }
 0x16f   :  { %v452_v47 = vpop.eup %451 }
 0x170   :  { %v454_v48 = vpop.eup %453  ;;  %v127_v49 = vmul.f32 %v452_v47, %v95_v20  ;;  %v148_v56 = vadd.f32 %v385_v52, %v137_v50 }
 0x171   :  { %v128_v51 = vmul.f32 %v454_v48, %v96_v13 }
 0x172   :  { %v138_v53 = vmul.f32 %v384_v46, %v127_v49 }
 0x173   :  { %v456_v54 = vpop.eup %455  ;;  %v139_v58 = vmul.f32 %v384_v46, %v128_v51 }
 0x174   :  { %v129_v55 = vmul.f32 %v456_v54, %v97_v21  ;;  %v149_v57 = vadd.f32 %v385_v52, %v138_v53 }
 0x175   :  { %v150_v61 = vadd.f32 %v385_v52, %v139_v58 }
 0x176   :  { %v152_v59 = vpack.c.bf16 %v149_v57, %v148_v56  ;;  %v140_v60 = vmul.f32 %v384_v46, %v129_v55 }
 0x178   :  { %424 = vmatprep.mubr.msk.bf16.mxu0 %vm76_vm0, %v152_v59  ;;  %432 = vmatprep.mubr.msk.bf16.mxu1 %vm76_vm0, %v152_v59  ;;  %v151_v62 = vadd.f32 %v385_v52, %v140_v60 }
 0x17a   :  { %v153_v63 = vpack.c.bf16 %v151_v62, %v150_v61 }
 0x17c   :  { %425 = vmatmul.mubr.msk.bf16.vlgmr.msra.gmra.mrb[0].mxu0 %vm76_vm0, %v153_v63  ;;  %433 = vmatmul.mubr.msk.bf16.vlgmr.msra.gmra.mrb[0].mxu1 %vm76_vm0, %v153_v63 }
 0x24f   :  { %v426_v2 = vpop.f32.mrb[0].mxu0  ;;  %v434_v3 = vpop.f32.mrb[0].mxu1 }
 0x250   :  { %v226_v4 = vadd.f32 %v426_v2, %v386_v0  ;;  %v323_v5 = vadd.f32 %v434_v3, %v395_v1  ;;  %v217_v6 = vpop.f32.mrb[1].mxu0  ;;  %v314_v7 = vpop.f32.mrb[1].mxu1 }
 0x251   :  { %v218_v8 = vadd.f32 %v386_v0, %v217_v6  ;;  %v315_v9 = vadd.f32 %v395_v1, %v314_v7  ;;  %v427_v10 = vpop.f32.mrb[2].mxu0  ;;  %v435_v11 = vpop.f32.mrb[2].mxu1 }
 0x252   :  { %v234_v12 = vmul.f32 0.35355338, %v226_v4  ;;  %v410_v13 = vpack.c.bf16 %v323_v5, %v323_v5  ;;  %v229_v14 = vadd.f32 %v427_v10, %v386_v0  ;;  %v326_v15 = vadd.f32 %v435_v11, %v395_v1  ;;  %v220_v16 = vpop.f32.mrb[3].mxu0  ;;  %v317_v17 = vpop.f32.mrb[3].mxu1 }
 0x253   :  { %v232_v18 = vmul.f32 0.35355338, %v218_v8  ;;  %v408_v19 = vpack.c.bf16 %v315_v9, %v315_v9  ;;  %v221_v20 = vadd.f32 %v386_v0, %v220_v16  ;;  %v318_v21 = vadd.f32 %v395_v1, %v317_v17 }
 0x254   :  { %v406_v22 = vpack.c.bf16 %v234_v12, %v234_v12  ;;  %348 = vst.msk [vmem:[#allocation9 + $0x8] sm:$0xf] %vm345_vm2, %v410_v13  ;;  %v235_v23 = vmul.f32 0.35355338, %v229_v14  ;;  %v411_v24 = vpack.c.bf16 %v326_v15, %v326_v15 }
 0x255   :  { %v404_v25 = vpack.c.bf16 %v232_v18, %v232_v18  ;;  %346 = vst.msk [vmem:[#allocation9] sm:$0xf] %vm345_vm2, %v408_v19  ;;  %v233_v26 = vmul.f32 0.35355338, %v221_v20  ;;  %v409_v27 = vpack.c.bf16 %v318_v21, %v318_v21 }
 0x256   :  { %255 = vst.msk [vmem:[#allocation8 + $0x8] sm:$0xf] %vm252_vm1, %v406_v22  ;;  %v407_v28 = vpack.c.bf16 %v235_v23, %v235_v23 }
 0x257   :  { %349 = vst.msk [vmem:[#allocation9 + $0xc] sm:$0xf] %vm345_vm2, %v411_v24  ;;  %v405_v29 = vpack.c.bf16 %v233_v26, %v233_v26  ;;  %347 = vst.msk [vmem:[#allocation9 + $0x4] sm:$0xf] %vm345_vm2, %v409_v27 }
 0x258   :  { %253 = vst.msk [vmem:[#allocation8] sm:$0xf] %vm252_vm1, %v404_v25  ;;  %256 = vst.msk [vmem:[#allocation8 + $0xc] sm:$0xf] %vm252_vm1, %v407_v28 }
 0x259   :  { %534 = shalt.err (!%p531_p0)
}
 0x25a   :  { %s535_s10 = scalar_lea.hbm %s748_s8, 256 }
 0x25b   :  { %p536_p1 = scmp.ne.s32.totalorder %s748_s8, %s535_s10  ;;  %p539_p2 = scmp.lt.u32.totalorder %s535_s10, %s748_s8 }
 0x25d   :  { %p541_p3 = pnand %p539_p2, %p536_p1 }
 0x25f   :  { %544 = shalt.err (!%p541_p3)
}
 0x260   :  { %373 = dma.vmem_to_hbm [thread:$0]  %s368_s6, 256, %s748_s8, [#allocation10], %s576_s15, %s576_s15, %s577_s16   ;;  %254 = vst.msk [vmem:[#allocation8 + $0x4] sm:$0xf] %vm252_vm1, %v405_v29 }
 0x261   :  { %s545_s19 = scalar_lea.vmem %s701_s3, 256  ;;  %p550_p5 = scmp.lt.s32.totalorder %s701_s3, %s701_s3 }
 0x262   :  { %p546_p4 = scmp.ne.s32.totalorder %s701_s3, %s545_s19  ;;  %p551_p6 = scmp.lt.s32.totalorder %s545_s19, %s545_s19 }
 0x264   :  { %p552_p7 = por %p551_p6, %p550_p5 }
 0x266   :  { %p553_p8 = pnand %p552_p7, %p546_p4 }
 0x268   :  { %556 = shalt.err (!%p553_p8)
}
 0x269   :  { %s557_s0 = scalar_lea.hbm %s747_s7, 256 }
 0x26a   :  { %p558_p9 = scmp.ne.s32.totalorder %s747_s7, %s557_s0  ;;  %p561_p10 = scmp.lt.u32.totalorder %s557_s0, %s747_s7 }
 0x26c   :  { %p563_p11 = pnand %p561_p10, %p558_p9 }
 0x26e   :  { %566 = shalt.err (!%p563_p11)
}
 0x26f   :  { %361 = dma.vmem_to_hbm [thread:$0]  %s701_s3, 256, %s747_s7, [#allocation4], %s576_s15, %s576_s15, %s577_s16  }
 0x270   :  { %571 = dma.done.wait [#allocation4], 256  }
 0x271   :  { %572 = vsyncadd [#allocation4], 4294967040 }
 0x272   :  { %573 = dma.done.wait [#allocation10], 256  }
 0x273   :  { %574 = vsyncadd [#allocation10], 4294967040 }
 0x274   :  { %380 = vsyncpa [#allocation3], 1 }
 0x275   :  { %381 = vsyncpa [#allocation6], 1 }
 0x276   :  { %382 = vsyncpa [#allocation4], 1 }
 0x277   :  { %383 = vsyncpa [#allocation10], 1 }

</bundles_post_ra>
